<compile_context>
chip_gen: v5e
topology: v5e:2x2
jax: 0.10.0
libtpu: 0.0.40
codegen_flags: <defaults>
</compile_context>

<pallas_src>
import jax
import jax.numpy as jnp
from jax import lax
from jax.experimental import pallas as pl
from jax.experimental.pallas import tpu as pltpu

# ---------------- config (matches what the PyTorch forward implies) ----------
B = 2           # batch
SEQ_I = 8       # x sequence length
SEQ_J = 8       # m sequence length
N_HEAD = 2
DIM_HEAD = 16
D_MODEL = 256   # must be 256: forward hard-codes nn.Linear(256, d_model)
M_MODEL = 256   # defaults to d_model in __init__
HD = N_HEAD * DIM_HEAD
SCALE = DIM_HEAD ** (-0.5)

# TODO(synk): dropout (p=0.1) is implemented as identity (eval-mode semantics);
#             training-mode RNG dropout and the mask / rel_pos_bias paths are
#             not reproduced.


def _softmax_lastdim(s):
    """Numerically-stable softmax over the last axis, f32, EUP reciprocal."""
    s_max = jnp.max(s, axis=-1, keepdims=True)
    e = jnp.exp(s - s_max)
    denom = jnp.sum(e, axis=-1, keepdims=True)
    return e * pl.reciprocal(denom, approx=True)


def bca_kernel(x_ref, m_ref, wx_ref, wm_ref, wof_ref, wmof_ref,
               bx_ref, bm_ref, o_ref):
    # Flatten batch onto the sublane axis for the big K=256 projections.
    xf = x_ref[...].reshape(B * SEQ_I, D_MODEL).astype(jnp.bfloat16)
    mf = m_ref[...].reshape(B * SEQ_J, M_MODEL).astype(jnp.bfloat16)

    # Fused input projections: [qk*scale | v] and [m_qk | m_v] (bf16 in, f32 acc).
    qk_v = jnp.dot(xf, wx_ref[...], preferred_element_type=jnp.float32)     # (B*I, 2*HD)
    mqk_mv = jnp.dot(mf, wm_ref[...], preferred_element_type=jnp.float32)   # (B*J, 2*HD)

    # Cast once to bf16 so every downstream MXU operand is bf16 (no f32 emulation).
    qk_v = qk_v.reshape(B, SEQ_I, 2 * HD).astype(jnp.bfloat16)
    mqk_mv = mqk_mv.reshape(B, SEQ_J, 2 * HD).astype(jnp.bfloat16)

    out_heads = []      # per-head (B, I, dh) f32
    m_out_heads = []    # per-head (B, J, dh) f32

    for h in range(N_HEAD):                      # static, unrolled head loop
        lo = h * DIM_HEAD
        qk_h = qk_v[:, :, lo:lo + DIM_HEAD]                  # (B, I, dh), scale folded in
        v_h = qk_v[:, :, HD + lo:HD + lo + DIM_HEAD]         # (B, I, dh)
        mqk_h = mqk_mv[:, :, lo:lo + DIM_HEAD]               # (B, J, dh)
        mv_h = mqk_mv[:, :, HD + lo:HD + lo + DIM_HEAD]      # (B, J, dh)

        # sim[b,i,j]   = sum_d qk_h[b,i,d]  * mqk_h[b,j,d]
        sim = lax.dot_general(qk_h, mqk_h, (((2,), (2,)), ((0,), (0,))),
                              preferred_element_type=jnp.float32)            # (B, I, J)
        # sim_t[b,j,i] = sum_d mqk_h[b,j,d] * qk_h[b,i,d]   (softmax over its
        # last axis == softmax(sim, axis=-2) transposed; avoids any transpose)
        sim_t = lax.dot_general(mqk_h, qk_h, (((2,), (2,)), ((0,), (0,))),
                                preferred_element_type=jnp.float32)          # (B, J, I)

        attn = _softmax_lastdim(sim).astype(jnp.bfloat16)        # x attends over m (J)
        m_attn_t = _softmax_lastdim(sim_t).astype(jnp.bfloat16)  # m attends over x (I)

        # out_h[b,i,d]   = sum_j attn[b,i,j]   * m_v[b,j,d]
        out_heads.append(
            lax.dot_general(attn, mv_h, (((2,), (1,)), ((0,), (0,))),
                            preferred_element_type=jnp.float32))             # (B, I, dh)
        # m_out_h[b,j,d] = sum_i m_attn[b,i,j] * v[b,i,d]
        m_out_heads.append(
            lax.dot_general(m_attn_t, v_h, (((2,), (1,)), ((0,), (0,))),
                            preferred_element_type=jnp.float32))             # (B, J, dh)

    # Lane-concat heads (cheap XLU select), one K=HD output projection per side.
    out_all = (jnp.concatenate(out_heads, axis=-1)
               .reshape(B * SEQ_I, HD).astype(jnp.bfloat16))                 # (B*I, HD)
    m_out_all = (jnp.concatenate(m_out_heads, axis=-1)
                 .reshape(B * SEQ_J, HD).astype(jnp.bfloat16))               # (B*J, HD)

    fin_x = (jnp.dot(out_all, wof_ref[...], preferred_element_type=jnp.float32)
             + bx_ref[...])                                                  # (B*I, 256)
    fin_m = (jnp.dot(m_out_all, wmof_ref[...], preferred_element_type=jnp.float32)
             + bm_ref[...])                                                  # (B*J, 256)

    # Two direct lane-dense (256-lane), sublane-aligned (8-row) stores — no
    # concatenated intermediate copy in VMEM.
    o_ref[:, :SEQ_I, :] = fin_x.reshape(B, SEQ_I, D_MODEL).astype(o_ref.dtype)
    o_ref[:, SEQ_I:, :] = fin_m.reshape(B, SEQ_J, M_MODEL).astype(o_ref.dtype)


def fold_params(params):
    """One-time weight folding (f32 algebra, bf16 storage). Call ONCE at param
    creation time, NOT per forward call."""
    (wqk, wmqk, wv, wmv, wout, bout, wmout, bmout, wfin, bfin) = params
    wx = jnp.concatenate([wqk * SCALE, wv], axis=1).astype(jnp.bfloat16)   # (D_MODEL, 2*HD)
    wm = jnp.concatenate([wmqk, wmv], axis=1).astype(jnp.bfloat16)         # (M_MODEL, 2*HD)
    wof = (wout @ wfin).astype(jnp.bfloat16)      # (HD, D_MODEL)  to_out  . final
    wmof = (wmout @ wfin).astype(jnp.bfloat16)    # (HD, D_MODEL)  m_to_out. final
    bx = (bout @ wfin + bfin).astype(jnp.float32)   # (1, D_MODEL)
    bm = (bmout @ wfin + bfin).astype(jnp.float32)  # (1, D_MODEL)
    return wx, wm, wof, wmof, bx, bm


@jax.jit
def bidirectional_cross_attention(x, m, wx, wm, wof, wmof, bx, bm):
    """x: (B, I, D_MODEL), m: (B, J, M_MODEL) -> (B, I+J, D_MODEL).
    Takes pre-folded params; the traced computation is exactly one pallas_call."""
    vmem = pl.BlockSpec(memory_space=pltpu.MemorySpace.VMEM)   # whole-array, VMEM-resident
    return pl.pallas_call(
        bca_kernel,
        out_shape=jax.ShapeDtypeStruct((B, SEQ_I + SEQ_J, D_MODEL), x.dtype),
        in_specs=[vmem] * 8,
        out_specs=vmem,
        compiler_params=pltpu.CompilerParams(vmem_limit_bytes=32 * 1024 * 1024),
    )(x, m, wx, wm, wof, wmof, bx, bm)


def reference(x, m, params):
    """Pure-JAX f32 reference mirroring the PyTorch forward exactly."""
    (wqk, wmqk, wv, wmv, wout, bout, wmout, bmout, wfin, bfin) = params
    qk = x @ wqk
    v = x @ wv
    m_qk = m @ wmqk
    m_v = m @ wmv

    def split_heads(t):  # b n (h d) -> b h n d
        b, n, _ = t.shape
        return t.reshape(b, n, N_HEAD, DIM_HEAD).transpose(0, 2, 1, 3)

    qk, m_qk, v, m_v = map(split_heads, (qk, m_qk, v, m_v))
    sim = jnp.einsum('bhid,bhjd->bhij', qk, m_qk) * SCALE
    attn = jax.nn.softmax(sim, axis=-1)
    m_attn = jax.nn.softmax(sim, axis=-2)
    out = jnp.einsum('bhij,bhjd->bhid', attn, m_v)
    m_out = jnp.einsum('bhji,bhjd->bhid', m_attn, v)

    def merge_heads(t):  # b h n d -> b n (h d)
        b, h, n, d = t.shape
        return t.transpose(0, 2, 1, 3).reshape(b, n, h * d)

    out = merge_heads(out) @ wout + bout[0]
    m_out = merge_heads(m_out) @ wmout + bmout[0]
    combined = jnp.concatenate([out, m_out], axis=1)
    return combined @ wfin + bfin[0]


def init_params(key):
    ks = jax.random.split(key, 10)
    def w(k, shape, fan_in):
        return (jax.random.uniform(k, shape, jnp.float32, -1.0, 1.0) / (fan_in ** 0.5))
    # Weights stored as (in, out) so the kernel computes x @ W directly
    # (PyTorch nn.Linear does x @ W.T; we just pre-transpose deterministic init).
    wqk   = w(ks[0], (D_MODEL, HD), D_MODEL)
    wmqk  = w(ks[1], (M_MODEL, HD), M_MODEL)
    wv    = w(ks[2], (D_MODEL, HD), D_MODEL)
    wmv   = w(ks[3], (M_MODEL, HD), M_MODEL)
    wout  = w(ks[4], (HD, D_MODEL), HD)
    bout  = w(ks[5], (1, D_MODEL), HD)
    wmout = w(ks[6], (HD, M_MODEL), HD)
    bmout = w(ks[7], (1, M_MODEL), HD)
    wfin  = w(ks[8], (256, D_MODEL), 256)     # hard-coded combined_dim=256 in forward
    bfin  = w(ks[9], (1, D_MODEL), 256)
    return (wqk, wmqk, wv, wmv, wout, bout, wmout, bmout, wfin, bfin)


if __name__ == "__main__":
    key = jax.random.PRNGKey(0)
    kx, km, kp = jax.random.split(key, 3)
    x = jax.random.normal(kx, (B, SEQ_I, D_MODEL), jnp.float32)
    m = jax.random.normal(km, (B, SEQ_J, M_MODEL), jnp.float32)
    params = init_params(kp)

    # One-time folding, outside the per-call path (the jitted forward below
    # traces to a single pallas_call and nothing else).
    folded = jax.block_until_ready(fold_params(params))

    out = bidirectional_cross_attention(x, m, *folded)
    out = jax.block_until_ready(out)

    ref = reference(x, m, params)
    assert out.shape == (B, SEQ_I + SEQ_J, D_MODEL), out.shape
    # bf16 matmul operands (f32 accumulation) + folded bf16 output weights +
    # approx softmax reciprocal -> looser tolerance than a pure-f32 path.
    max_err = float(jnp.max(jnp.abs(out - ref)))
    assert jnp.allclose(out, ref, atol=2e-2, rtol=2e-2), max_err

    print("KERNEL_OK")
</pallas_src>

<mosaic_0001>
module attributes {stable_mosaic.version = 11 : i64} {
  func.func @bca_kernel(%arg0: memref<2x8x256xf32, #tpu.memory_space<vmem>>, %arg1: memref<2x8x256xf32, #tpu.memory_space<vmem>>, %arg2: memref<256x64xbf16, #tpu.memory_space<vmem>>, %arg3: memref<256x64xbf16, #tpu.memory_space<vmem>>, %arg4: memref<32x256xbf16, #tpu.memory_space<vmem>>, %arg5: memref<32x256xbf16, #tpu.memory_space<vmem>>, %arg6: memref<1x256xf32, #tpu.memory_space<vmem>>, %arg7: memref<1x256xf32, #tpu.memory_space<vmem>>, %arg8: memref<2x16x256xf32, #tpu.memory_space<vmem>>) attributes {dimension_semantics = [], scalar_prefetch = 0 : i64, scratch_operands = 0 : i64, tpu.core_type = #tpu.core_type<tc>} {
    %c0 = arith.constant 0 : index
    %c0_0 = arith.constant 0 : index
    %c0_1 = arith.constant 0 : index
    %0 = vector.load %arg0[%c0, %c0_0, %c0_1] : memref<2x8x256xf32, #tpu.memory_space<vmem>>, vector<2x8x256xf32>
    %1 = vector.shape_cast %0 : vector<2x8x256xf32> to vector<16x256xf32>
    %2 = arith.truncf %1 : vector<16x256xf32> to vector<16x256xbf16>
    %c0_2 = arith.constant 0 : index
    %c0_3 = arith.constant 0 : index
    %c0_4 = arith.constant 0 : index
    %3 = vector.load %arg1[%c0_2, %c0_3, %c0_4] : memref<2x8x256xf32, #tpu.memory_space<vmem>>, vector<2x8x256xf32>
    %4 = vector.shape_cast %3 : vector<2x8x256xf32> to vector<16x256xf32>
    %5 = arith.truncf %4 : vector<16x256xf32> to vector<16x256xbf16>
    %c0_5 = arith.constant 0 : index
    %c0_6 = arith.constant 0 : index
    %6 = vector.load %arg2[%c0_5, %c0_6] : memref<256x64xbf16, #tpu.memory_space<vmem>>, vector<256x64xbf16>
    %cst = arith.constant dense<0.000000e+00> : vector<16x64xf32>
    %7 = tpu.matmul %2, %6, %cst {dimension_numbers = #tpu.dot_dimension_numbers<[1], [0], [0], [1], [0, 0, 1, 1], [], []>} : vector<16x256xbf16>, vector<256x64xbf16>, vector<16x64xf32> -> vector<16x64xf32>
    %c0_7 = arith.constant 0 : index
    %c0_8 = arith.constant 0 : index
    %8 = vector.load %arg3[%c0_7, %c0_8] : memref<256x64xbf16, #tpu.memory_space<vmem>>, vector<256x64xbf16>
    %cst_9 = arith.constant dense<0.000000e+00> : vector<16x64xf32>
    %9 = tpu.matmul %5, %8, %cst_9 {dimension_numbers = #tpu.dot_dimension_numbers<[1], [0], [0], [1], [0, 0, 1, 1], [], []>} : vector<16x256xbf16>, vector<256x64xbf16>, vector<16x64xf32> -> vector<16x64xf32>
    %10 = vector.shape_cast %7 : vector<16x64xf32> to vector<2x8x64xf32>
    %11 = arith.truncf %10 : vector<2x8x64xf32> to vector<2x8x64xbf16>
    %12 = vector.shape_cast %9 : vector<16x64xf32> to vector<2x8x64xf32>
    %13 = arith.truncf %12 : vector<2x8x64xf32> to vector<2x8x64xbf16>
    %14 = vector.extract_strided_slice %11 {offsets = [0, 0, 0], sizes = [2, 8, 16], strides = [1, 1, 1]} : vector<2x8x64xbf16> to vector<2x8x16xbf16>
    %15 = vector.extract_strided_slice %11 {offsets = [0, 0, 32], sizes = [2, 8, 16], strides = [1, 1, 1]} : vector<2x8x64xbf16> to vector<2x8x16xbf16>
    %16 = vector.extract_strided_slice %13 {offsets = [0, 0, 0], sizes = [2, 8, 16], strides = [1, 1, 1]} : vector<2x8x64xbf16> to vector<2x8x16xbf16>
    %17 = vector.extract_strided_slice %13 {offsets = [0, 0, 32], sizes = [2, 8, 16], strides = [1, 1, 1]} : vector<2x8x64xbf16> to vector<2x8x16xbf16>
    %cst_10 = arith.constant dense<0.000000e+00> : vector<2x8x8xf32>
    %18 = tpu.matmul %14, %16, %cst_10 {dimension_numbers = #tpu.dot_dimension_numbers<[2], [2], [1], [1], [0, 0, 0, 1, 1, 1], [0], [0]>} : vector<2x8x16xbf16>, vector<2x8x16xbf16>, vector<2x8x8xf32> -> vector<2x8x8xf32>
    %cst_11 = arith.constant dense<0.000000e+00> : vector<2x8x8xf32>
    %19 = tpu.matmul %16, %14, %cst_11 {dimension_numbers = #tpu.dot_dimension_numbers<[2], [2], [1], [1], [0, 0, 0, 1, 1, 1], [0], [0]>} : vector<2x8x16xbf16>, vector<2x8x16xbf16>, vector<2x8x8xf32> -> vector<2x8x8xf32>
    %cst_12 = arith.constant dense<0xFF800000> : vector<2x8xf32>
    %20 = vector.multi_reduction <maximumf>, %18, %cst_12 [2] : vector<2x8x8xf32> to vector<2x8xf32>
    %21 = vector.shape_cast %20 : vector<2x8xf32> to vector<2x8x1xf32>
    %22 = vector.broadcast %21 : vector<2x8x1xf32> to vector<2x8x8xf32>
    %23 = arith.subf %18, %22 : vector<2x8x8xf32>
    %24 = math.exp %23 : vector<2x8x8xf32>
    %cst_13 = arith.constant dense<0.000000e+00> : vector<2x8xf32>
    %25 = vector.multi_reduction <add>, %24, %cst_13 [2] : vector<2x8x8xf32> to vector<2x8xf32>
    %26 = vector.shape_cast %25 : vector<2x8xf32> to vector<2x8x1xf32>
    %27 = tpu.reciprocal %26 {approx = true} : vector<2x8x1xf32> -> vector<2x8x1xf32>
    %28 = vector.broadcast %27 : vector<2x8x1xf32> to vector<2x8x8xf32>
    %29 = arith.mulf %24, %28 : vector<2x8x8xf32>
    %30 = arith.truncf %29 : vector<2x8x8xf32> to vector<2x8x8xbf16>
    %cst_14 = arith.constant dense<0xFF800000> : vector<2x8xf32>
    %31 = vector.multi_reduction <maximumf>, %19, %cst_14 [2] : vector<2x8x8xf32> to vector<2x8xf32>
    %32 = vector.shape_cast %31 : vector<2x8xf32> to vector<2x8x1xf32>
    %33 = vector.broadcast %32 : vector<2x8x1xf32> to vector<2x8x8xf32>
    %34 = arith.subf %19, %33 : vector<2x8x8xf32>
    %35 = math.exp %34 : vector<2x8x8xf32>
    %cst_15 = arith.constant dense<0.000000e+00> : vector<2x8xf32>
    %36 = vector.multi_reduction <add>, %35, %cst_15 [2] : vector<2x8x8xf32> to vector<2x8xf32>
    %37 = vector.shape_cast %36 : vector<2x8xf32> to vector<2x8x1xf32>
    %38 = tpu.reciprocal %37 {approx = true} : vector<2x8x1xf32> -> vector<2x8x1xf32>
    %39 = vector.broadcast %38 : vector<2x8x1xf32> to vector<2x8x8xf32>
    %40 = arith.mulf %35, %39 : vector<2x8x8xf32>
    %41 = arith.truncf %40 : vector<2x8x8xf32> to vector<2x8x8xbf16>
    %cst_16 = arith.constant dense<0.000000e+00> : vector<2x8x16xf32>
    %42 = tpu.matmul %30, %17, %cst_16 {dimension_numbers = #tpu.dot_dimension_numbers<[2], [1], [1], [2], [0, 0, 0, 1, 1, 2], [0], [0]>} : vector<2x8x8xbf16>, vector<2x8x16xbf16>, vector<2x8x16xf32> -> vector<2x8x16xf32>
    %cst_17 = arith.constant dense<0.000000e+00> : vector<2x8x16xf32>
    %43 = tpu.matmul %41, %15, %cst_17 {dimension_numbers = #tpu.dot_dimension_numbers<[2], [1], [1], [2], [0, 0, 0, 1, 1, 2], [0], [0]>} : vector<2x8x8xbf16>, vector<2x8x16xbf16>, vector<2x8x16xf32> -> vector<2x8x16xf32>
    %44 = vector.extract_strided_slice %11 {offsets = [0, 0, 16], sizes = [2, 8, 16], strides = [1, 1, 1]} : vector<2x8x64xbf16> to vector<2x8x16xbf16>
    %45 = vector.extract_strided_slice %11 {offsets = [0, 0, 48], sizes = [2, 8, 16], strides = [1, 1, 1]} : vector<2x8x64xbf16> to vector<2x8x16xbf16>
    %46 = vector.extract_strided_slice %13 {offsets = [0, 0, 16], sizes = [2, 8, 16], strides = [1, 1, 1]} : vector<2x8x64xbf16> to vector<2x8x16xbf16>
    %47 = vector.extract_strided_slice %13 {offsets = [0, 0, 48], sizes = [2, 8, 16], strides = [1, 1, 1]} : vector<2x8x64xbf16> to vector<2x8x16xbf16>
    %cst_18 = arith.constant dense<0.000000e+00> : vector<2x8x8xf32>
    %48 = tpu.matmul %44, %46, %cst_18 {dimension_numbers = #tpu.dot_dimension_numbers<[2], [2], [1], [1], [0, 0, 0, 1, 1, 1], [0], [0]>} : vector<2x8x16xbf16>, vector<2x8x16xbf16>, vector<2x8x8xf32> -> vector<2x8x8xf32>
    %cst_19 = arith.constant dense<0.000000e+00> : vector<2x8x8xf32>
    %49 = tpu.matmul %46, %44, %cst_19 {dimension_numbers = #tpu.dot_dimension_numbers<[2], [2], [1], [1], [0, 0, 0, 1, 1, 1], [0], [0]>} : vector<2x8x16xbf16>, vector<2x8x16xbf16>, vector<2x8x8xf32> -> vector<2x8x8xf32>
    %cst_20 = arith.constant dense<0xFF800000> : vector<2x8xf32>
    %50 = vector.multi_reduction <maximumf>, %48, %cst_20 [2] : vector<2x8x8xf32> to vector<2x8xf32>
    %51 = vector.shape_cast %50 : vector<2x8xf32> to vector<2x8x1xf32>
    %52 = vector.broadcast %51 : vector<2x8x1xf32> to vector<2x8x8xf32>
    %53 = arith.subf %48, %52 : vector<2x8x8xf32>
    %54 = math.exp %53 : vector<2x8x8xf32>
    %cst_21 = arith.constant dense<0.000000e+00> : vector<2x8xf32>
    %55 = vector.multi_reduction <add>, %54, %cst_21 [2] : vector<2x8x8xf32> to vector<2x8xf32>
    %56 = vector.shape_cast %55 : vector<2x8xf32> to vector<2x8x1xf32>
    %57 = tpu.reciprocal %56 {approx = true} : vector<2x8x1xf32> -> vector<2x8x1xf32>
    %58 = vector.broadcast %57 : vector<2x8x1xf32> to vector<2x8x8xf32>
    %59 = arith.mulf %54, %58 : vector<2x8x8xf32>
    %60 = arith.truncf %59 : vector<2x8x8xf32> to vector<2x8x8xbf16>
    %cst_22 = arith.constant dense<0xFF800000> : vector<2x8xf32>
    %61 = vector.multi_reduction <maximumf>, %49, %cst_22 [2] : vector<2x8x8xf32> to vector<2x8xf32>
    %62 = vector.shape_cast %61 : vector<2x8xf32> to vector<2x8x1xf32>
    %63 = vector.broadcast %62 : vector<2x8x1xf32> to vector<2x8x8xf32>
    %64 = arith.subf %49, %63 : vector<2x8x8xf32>
    %65 = math.exp %64 : vector<2x8x8xf32>
    %cst_23 = arith.constant dense<0.000000e+00> : vector<2x8xf32>
    %66 = vector.multi_reduction <add>, %65, %cst_23 [2] : vector<2x8x8xf32> to vector<2x8xf32>
    %67 = vector.shape_cast %66 : vector<2x8xf32> to vector<2x8x1xf32>
    %68 = tpu.reciprocal %67 {approx = true} : vector<2x8x1xf32> -> vector<2x8x1xf32>
    %69 = vector.broadcast %68 : vector<2x8x1xf32> to vector<2x8x8xf32>
    %70 = arith.mulf %65, %69 : vector<2x8x8xf32>
    %71 = arith.truncf %70 : vector<2x8x8xf32> to vector<2x8x8xbf16>
    %cst_24 = arith.constant dense<0.000000e+00> : vector<2x8x16xf32>
    %72 = tpu.matmul %60, %47, %cst_24 {dimension_numbers = #tpu.dot_dimension_numbers<[2], [1], [1], [2], [0, 0, 0, 1, 1, 2], [0], [0]>} : vector<2x8x8xbf16>, vector<2x8x16xbf16>, vector<2x8x16xf32> -> vector<2x8x16xf32>
    %cst_25 = arith.constant dense<0.000000e+00> : vector<2x8x16xf32>
    %73 = tpu.matmul %71, %45, %cst_25 {dimension_numbers = #tpu.dot_dimension_numbers<[2], [1], [1], [2], [0, 0, 0, 1, 1, 2], [0], [0]>} : vector<2x8x8xbf16>, vector<2x8x16xbf16>, vector<2x8x16xf32> -> vector<2x8x16xf32>
    %74 = tpu.concatenate %42, %72 in 2 : vector<2x8x16xf32>, vector<2x8x16xf32> -> vector<2x8x32xf32>
    %75 = vector.shape_cast %74 : vector<2x8x32xf32> to vector<16x32xf32>
    %76 = arith.truncf %75 : vector<16x32xf32> to vector<16x32xbf16>
    %77 = tpu.concatenate %43, %73 in 2 : vector<2x8x16xf32>, vector<2x8x16xf32> -> vector<2x8x32xf32>
    %78 = vector.shape_cast %77 : vector<2x8x32xf32> to vector<16x32xf32>
    %79 = arith.truncf %78 : vector<16x32xf32> to vector<16x32xbf16>
    %c0_26 = arith.constant 0 : index
    %c0_27 = arith.constant 0 : index
    %80 = vector.load %arg4[%c0_26, %c0_27] : memref<32x256xbf16, #tpu.memory_space<vmem>>, vector<32x256xbf16>
    %cst_28 = arith.constant dense<0.000000e+00> : vector<16x256xf32>
    %81 = tpu.matmul %76, %80, %cst_28 {dimension_numbers = #tpu.dot_dimension_numbers<[1], [0], [0], [1], [0, 0, 1, 1], [], []>} : vector<16x32xbf16>, vector<32x256xbf16>, vector<16x256xf32> -> vector<16x256xf32>
    %c0_29 = arith.constant 0 : index
    %c0_30 = arith.constant 0 : index
    %82 = vector.load %arg6[%c0_29, %c0_30] : memref<1x256xf32, #tpu.memory_space<vmem>>, vector<1x256xf32>
    %83 = vector.broadcast %82 : vector<1x256xf32> to vector<16x256xf32>
    %84 = arith.addf %81, %83 : vector<16x256xf32>
    %c0_31 = arith.constant 0 : index
    %c0_32 = arith.constant 0 : index
    %85 = vector.load %arg5[%c0_31, %c0_32] : memref<32x256xbf16, #tpu.memory_space<vmem>>, vector<32x256xbf16>
    %cst_33 = arith.constant dense<0.000000e+00> : vector<16x256xf32>
    %86 = tpu.matmul %79, %85, %cst_33 {dimension_numbers = #tpu.dot_dimension_numbers<[1], [0], [0], [1], [0, 0, 1, 1], [], []>} : vector<16x32xbf16>, vector<32x256xbf16>, vector<16x256xf32> -> vector<16x256xf32>
    %c0_34 = arith.constant 0 : index
    %c0_35 = arith.constant 0 : index
    %87 = vector.load %arg7[%c0_34, %c0_35] : memref<1x256xf32, #tpu.memory_space<vmem>>, vector<1x256xf32>
    %88 = vector.broadcast %87 : vector<1x256xf32> to vector<16x256xf32>
    %89 = arith.addf %86, %88 : vector<16x256xf32>
    %90 = vector.shape_cast %84 : vector<16x256xf32> to vector<2x8x256xf32>
    %c0_36 = arith.constant 0 : index
    %c0_37 = arith.constant 0 : index
    %c0_38 = arith.constant 0 : index
    %91 = vector.load %arg8[%c0_36, %c0_37, %c0_38] : memref<2x16x256xf32, #tpu.memory_space<vmem>>, vector<2x8x256xf32>
    tpu.vector_store %arg8[%c0_36, %c0_37, %c0_38], %90 {strides = array<i32>} : memref<2x16x256xf32, #tpu.memory_space<vmem>>, vector<2x8x256xf32>,
    %92 = vector.shape_cast %89 : vector<16x256xf32> to vector<2x8x256xf32>
    %c0_39 = arith.constant 0 : index
    %c8 = arith.constant 8 : index
    %c0_40 = arith.constant 0 : index
    %93 = vector.load %arg8[%c0_39, %c8, %c0_40] : memref<2x16x256xf32, #tpu.memory_space<vmem>>, vector<2x8x256xf32>
    tpu.vector_store %arg8[%c0_39, %c8, %c0_40], %92 {strides = array<i32>} : memref<2x16x256xf32, #tpu.memory_space<vmem>>, vector<2x8x256xf32>,
    return
  }
}

</mosaic_0001>

<bundles_post_ra>
// kernel: bidirectional_cross_attention.1
= control target key start
LH: loop header
LB: loop body
LE: loop exit
PB: predicated region body
PF: predicated region fallthrough
CT: control target
= control target key end

     0   :  { %s1562_s0 = inlined_call_operand.vmem [shape: f32[2,8,256], index: 0, kind: input, shape index: {}]   ;;  %s1563_s1 = inlined_call_operand.vmem [shape: f32[2,8,256], index: 1, kind: input, shape index: {}]   ;;  %s1564_s2 = inlined_call_operand.vmem [shape: bf16[256,64], index: 2, kind: input, shape index: {}]   ;;  %s1565_s3 = inlined_call_operand.vmem [shape: bf16[256,64], index: 3, kind: input, shape index: {}]   ;;  %s1566_s4 = inlined_call_operand.vmem [shape: bf16[32,256], index: 4, kind: input, shape index: {}]   ;;  %s1567_s5 = inlined_call_operand.vmem [shape: bf16[32,256], index: 5, kind: input, shape index: {}]   ;;  %s1568_s6 = inlined_call_operand.vmem [shape: f32[1,256], index: 6, kind: input, shape index: {}]   ;;  %s1569_s7 = inlined_call_operand.vmem [shape: f32[1,256], index: 7, kind: input, shape index: {}]   ;;  %s1570_s8 = inlined_call_operand.hbm [shape: f32[2,16,256], index: 8, kind: output, shape index: {}]  }
   0x1   :  { %v1132_v0 = vld [vmem:[%s1564_s2 + $0x38] sm:$0xff]  ;;  %v1131_v4 = vld [vmem:[%s1564_s2 + $0x30] sm:$0xff]  ;;  %v1130_v8 = vld [vmem:[%s1564_s2 + $0x28] sm:$0xff] }
   0x2   :  { %v1140_v1 = vld [vmem:[%s1564_s2 + $0x78] sm:$0xff]  ;;  %171 = vmatpush.bf16.msra.mxu0 %v1132_v0  ;;  %v1139_v5 = vld [vmem:[%s1564_s2 + $0x70] sm:$0xff]  ;;  %v1138_v9 = vld [vmem:[%s1564_s2 + $0x68] sm:$0xff] }
   0x3   :  { %v1148_v2 = vld [vmem:[%s1565_s3 + $0x38] sm:$0xff]  ;;  %185 = vmatpush.bf16.msra.mxu1 %v1140_v1  ;;  %v1147_v6 = vld [vmem:[%s1565_s3 + $0x30] sm:$0xff]  ;;  %v1146_v10 = vld [vmem:[%s1565_s3 + $0x28] sm:$0xff] }
   0x4   :  { %v1156_v3 = vld [vmem:[%s1565_s3 + $0x78] sm:$0xff]  ;;  %327 = vmatpush.bf16.msra.mxu2 %v1148_v2  ;;  %v1155_v7 = vld [vmem:[%s1565_s3 + $0x70] sm:$0xff]  ;;  %v1154_v11 = vld [vmem:[%s1565_s3 + $0x68] sm:$0xff] }
   0x5   :  { %341 = vmatpush.bf16.msra.mxu3 %v1156_v3  ;;  %v1129_v12 = vld [vmem:[%s1564_s2 + $0x20] sm:$0xff] }
   0x6   :  { %172 = vmatpush.bf16.msra.mxu0 %v1131_v4  ;;  %v1137_v13 = vld [vmem:[%s1564_s2 + $0x60] sm:$0xff] }
   0x7   :  { %186 = vmatpush.bf16.msra.mxu1 %v1139_v5  ;;  %v1145_v14 = vld [vmem:[%s1565_s3 + $0x20] sm:$0xff] }
   0x8   :  { %328 = vmatpush.bf16.msra.mxu2 %v1147_v6  ;;  %v1153_v15 = vld [vmem:[%s1565_s3 + $0x60] sm:$0xff] }
   0x9   :  { %342 = vmatpush.bf16.msra.mxu3 %v1155_v7 }
   0xa   :  { %173 = vmatpush.bf16.msra.mxu0 %v1130_v8 }
   0xb   :  { %187 = vmatpush.bf16.msra.mxu1 %v1138_v9 }
   0xc   :  { %329 = vmatpush.bf16.msra.mxu2 %v1146_v10 }
   0xd   :  { %343 = vmatpush.bf16.msra.mxu3 %v1154_v11 }
   0xe   :  { %13 = vsyncpa [#allocation3], 0  ;;  %174 = vmatpush.bf16.msra.mxu0 %v1129_v12  ;;  %v1128_v16 = vld [vmem:[%s1564_s2 + $0x18] sm:$0xff]  ;;  %v1127_v20 = vld [vmem:[%s1564_s2 + $0x10] sm:$0xff]  ;;  %vm359_vm0 = vcmask 130048   ;;  %vm424_vm1 = vcmask 64512  }
   0xf   :  { %188 = vmatpush.bf16.msra.mxu1 %v1137_v13  ;;  %v1136_v17 = vld [vmem:[%s1564_s2 + $0x58] sm:$0xff]  ;;  %v1135_v21 = vld [vmem:[%s1564_s2 + $0x50] sm:$0xff]  ;;  %v1126_v24 = vld [vmem:[%s1564_s2 + $0x8] sm:$0xff]  ;;  %vm481_vm2 = vcmask 1043456   ;;  %s1241_s17 = smov 80   ;;  %s1242_s26 = smov 16  }
  0x10   :  { %330 = vmatpush.bf16.msra.mxu2 %v1145_v14  ;;  %v1144_v18 = vld [vmem:[%s1565_s3 + $0x18] sm:$0xff]  ;;  %v1143_v22 = vld [vmem:[%s1565_s3 + $0x10] sm:$0xff]  ;;  %v1134_v25 = vld [vmem:[%s1564_s2 + $0x48] sm:$0xff]  ;;  %vm826_vm3 = vcmask 261120   ;;  %s933_s30 = sshll.u32 %s1570_s8, 4  ;;  %s934_s30 = int_to_ptr.hbm [resolvable:$true] %s933_s30 }
  0x11   :  { %344 = vmatpush.bf16.msra.mxu3 %v1153_v15  ;;  %v1152_v19 = vld [vmem:[%s1565_s3 + $0x58] sm:$0xff]  ;;  %v1151_v23 = vld [vmem:[%s1565_s3 + $0x50] sm:$0xff]  ;;  %v1142_v26 = vld [vmem:[%s1565_s3 + $0x8] sm:$0xff] }
  0x12   :  { %175 = vmatpush.bf16.msra.mxu0 %v1128_v16  ;;  %v1150_v27 = vld [vmem:[%s1565_s3 + $0x48] sm:$0xff]  ;;  %v1125_v28 = vld [vmem:[%s1564_s2] sm:$0xff]  ;;  %v33_v33 = vld [vmem:[%s1562_s0 + $0x10] sm:$0xff] }
  0x13   :  { %189 = vmatpush.bf16.msra.mxu1 %v1136_v17  ;;  %v1133_v29 = vld [vmem:[%s1564_s2 + $0x40] sm:$0xff]  ;;  %v32_v34 = vld [vmem:[%s1562_s0 + $0x8] sm:$0xff]  ;;  %v34_v35 = vld [vmem:[%s1562_s0 + $0x18] sm:$0xff] }
  0x14   :  { %331 = vmatpush.bf16.msra.mxu2 %v1144_v18  ;;  %v1141_v30 = vld [vmem:[%s1565_s3] sm:$0xff]  ;;  %v39_v37 = vld [vmem:[%s1563_s1 + $0x10] sm:$0xff]  ;;  %v38_v38 = vld [vmem:[%s1563_s1 + $0x8] sm:$0xff]  ;;  %v36_v41 = vpack.c.bf16 %v34_v35, %v32_v34 }
  0x15   :  { %345 = vmatpush.bf16.msra.mxu3 %v1152_v19  ;;  %v1149_v31 = vld [vmem:[%s1565_s3 + $0x40] sm:$0xff]  ;;  %v40_v39 = vld [vmem:[%s1563_s1 + $0x18] sm:$0xff] }
  0x16   :  { %176 = vmatpush.bf16.msra.mxu0 %v1127_v20  ;;  %v31_v32 = vld [vmem:[%s1562_s0] sm:$0xff]  ;;  %v42_v43 = vpack.c.bf16 %v40_v39, %v38_v38  ;;  %s1239_s0 = smov 96  }
  0x17   :  { %190 = vmatpush.bf16.msra.mxu1 %v1135_v21  ;;  %v37_v36 = vld [vmem:[%s1563_s1] sm:$0xff]  ;;  %v35_v40 = vpack.c.bf16 %v33_v33, %v31_v32  ;;  %s1240_s1 = smov 112  }
  0x18   :  { %332 = vmatpush.bf16.msra.mxu2 %v1143_v22  ;;  %v41_v42 = vpack.c.bf16 %v39_v37, %v37_v36 }
  0x19   :  { %346 = vmatpush.bf16.msra.mxu3 %v1151_v23 }
  0x1a   :  { %177 = vmatpush.bf16.msra.mxu0 %v1126_v24 }
  0x1b   :  { %191 = vmatpush.bf16.msra.mxu1 %v1134_v25 }
  0x1c   :  { %333 = vmatpush.bf16.msra.mxu2 %v1142_v26 }
  0x1d   :  { %347 = vmatpush.bf16.msra.mxu3 %v1150_v27 }
  0x1e   :  { %178 = vmatpush.bf16.msra.mxu0 %v1125_v28 }
  0x1f   :  { %192 = vmatpush.bf16.msra.mxu1 %v1133_v29 }
  0x20   :  { %334 = vmatpush.bf16.msra.mxu2 %v1141_v30 }
  0x21   :  { %348 = vmatpush.bf16.msra.mxu3 %v1149_v31  ;;  %179 = vmatmul.bf16.vlgmr.msra.gmra.mxu0 %v35_v40 }
  0x22   :  { %193 = vmatmul.bf16.vlgmr.msra.gmra.mxu1 %v36_v41 }
  0x23   :  { %335 = vmatmul.bf16.vlgmr.msra.gmra.mxu2 %v41_v42 }
  0x24   :  { %349 = vmatmul.bf16.vlgmr.msra.gmra.mxu3 %v42_v43 }
  0x9e   :  { %v180_v44 = vpop.f32.mrf.mxu0 }
  0x9f   :  { %v194_v45 = vpop.f32.mrf.mxu1 }
  0xa0   :  { %v195_v46 = vadd.f32 %v194_v45, %v180_v44 }
  0xa2   :  { %v355_v47 = vpack.c.bf16 %v195_v46, %v195_v46 }
  0xa4   :  { %v361_v48 = vsel %vm359_vm0, %v355_v47, 0  ;;  %v523_v12 = vunpack.c.l.b16 %v355_v47 }
  0xa5   :  { %405 = vmatpush.bf16.xpose.msrb.mxu2 %v361_v48 }
  0xa6   :  { %v336_v49 = vpop.f32.mrf.mxu2  ;;  %v182_v52 = vpop.f32.mrf.mxu0  ;;  %v1422_v13 = vpack.c.b16 %v523_v12, %v523_v12 }
  0xa7   :  { %v350_v50 = vpop.f32.mrf.mxu3  ;;  %v196_v53 = vpop.f32.mrf.mxu1 }
  0xa8   :  { %v351_v51 = vadd.f32 %v350_v50, %v336_v49  ;;  %v197_v54 = vadd.f32 %v196_v53, %v182_v52 }
  0xaa   :  { %v357_v55 = vpack.c.bf16 %v351_v51, %v351_v51  ;;  %v356_v56 = vpack.c.bf16 %v197_v54, %v197_v54 }
  0xac   :  { %v364_v57 = vsel %vm359_vm0, %v357_v55, 0  ;;  %1075 = vmatmul.msk.bf16.vlgmr.msrb.gmra.mxu2 %vm359_vm0, %v357_v55  ;;  %v380_v58 = vsel %vm359_vm0, %v356_v56, 0  ;;  %v547_v14 = vunpack.c.l.b16 %v356_v56  ;;  %v474_v16 = vunpack.c.l.b16 %v357_v55 }
  0xad   :  { %373 = vmatpush.bf16.xpose.msrb.mxu0 %v364_v57  ;;  %418 = vmatpush.bf16.xpose.msrb.mxu3 %v380_v58 }
  0xae   :  { %v338_v59 = vpop.f32.mrf.mxu2  ;;  %v1425_v15 = vpack.c.b16 %v547_v14, %v547_v14  ;;  %v1430_v18 = vpack.c.b16 %v474_v16, %v474_v16 }
  0xaf   :  { %v352_v60 = vpop.f32.mrf.mxu3 }
  0xb0   :  { %v353_v61 = vadd.f32 %v352_v60, %v338_v59 }
  0xb2   :  { %v358_v62 = vpack.c.bf16 %v353_v61, %v353_v61 }
  0xb4   :  { %1073 = vmatmul.msk.bf16.vlgmr.msrb.gmra.mxu0 %vm359_vm0, %v355_v47  ;;  %v383_v63 = vsel %vm359_vm0, %v358_v62, 0  ;;  %1076 = vmatmul.msk.bf16.vlgmr.msrb.gmra.mxu3 %vm359_vm0, %v358_v62  ;;  %v499_v17 = vunpack.c.l.b16 %v358_v62 }
  0xb5   :  { %392 = vmatpush.bf16.xpose.msrb.mxu1 %v383_v63 }
  0xb6   :  { %v1433_v19 = vpack.c.b16 %v499_v17, %v499_v17 }
  0xbc   :  { %1074 = vmatmul.msk.bf16.vlgmr.msrb.gmra.mxu1 %vm359_vm0, %v356_v56 }
 0x12f   :  { %v407_v0 = vpop.f32.mrf.mxu2 }
 0x130   :  { %v449_v2 = vsel %vm424_vm1, %v407_v0, -inf }
 0x131   :  { %v375_v1 = vpop.f32.mrf.mxu0  ;;  %450 = vmax.xlane.f32.xlu0 %v449_v2 }
 0x132   :  { %v425_v3 = vsel %vm424_vm1, %v375_v1, -inf }
 0x133   :  { %426 = vmax.xlane.f32.xlu1 %v425_v3 }
 0x137   :  { %v409_v4 = vpop.f32.mrf.mxu2  ;;  %v420_v5 = vpop.f32.mrf.mxu3 }
 0x138   :  { %v452_v8 = vsel %vm424_vm1, %v420_v5, -inf }
 0x139   :  { %v377_v6 = vpop.f32.mrf.mxu0  ;;  %v394_v7 = vpop.f32.mrf.mxu1  ;;  %453 = vmax.xlane.f32.xlu0 %v452_v8 }
 0x13a   :  { %v428_v9 = vsel %vm424_vm1, %v394_v7, -inf }
 0x13b   :  { %429 = vmax.xlane.f32.xlu1 %v428_v9 }
 0x13f   :  { %v422_v10 = vpop.f32.mrf.mxu3 }
 0x141   :  { %v396_v11 = vpop.f32.mrf.mxu1 }
 0x14d   :  { %525 = vrot.lane.b32.xlu0 %v1422_v13, %s1239_s0 }
 0x154   :  { %549 = vrot.lane.b32.xlu1 %v1425_v15, %s1239_s0 }
 0x155   :  { %593 = vrot.lane.b32.xlu0 %v1425_v15, %s1240_s1 }
 0x15c   :  { %476 = vrot.lane.b32.xlu1 %v1430_v18, %s1239_s0 }
 0x15d   :  { %501 = vrot.lane.b32.xlu0 %v1433_v19, %s1239_s0 }
 0x164   :  { %572 = vrot.lane.b32.xlu1 %v1430_v18, %s1240_s1 }
 0x165   :  { %595 = vrot.lane.b32.xlu0 %v1433_v19, %s1240_s1 }
 0x1a4   :  { %v451_v20 = vpop.xlane.xlu0 %450 }
 0x1a5   :  { %v455_v21 = vsub.f32 %v407_v0, %v451_v20 }
 0x1a6   :  { %v427_v22 = vpop.xlane.xlu1 %426 }
 0x1a7   :  { %v457_v23 = vmul.f32 1.442695, %v455_v21  ;;  %v431_v24 = vsub.f32 %v375_v1, %v427_v22 }
 0x1a9   :  { %1181 = vpow2.f32 %v457_v23  ;;  %v433_v25 = vmul.f32 1.442695, %v431_v24 }
 0x1ab   :  { %1183 = vpow2.f32 %v433_v25 }
 0x1ac   :  { %v454_v26 = vpop.xlane.xlu0 %453 }
 0x1ad   :  { %v456_v28 = vsub.f32 %v420_v5, %v454_v26 }
 0x1ae   :  { %v430_v31 = vpop.xlane.xlu1 %429 }
 0x1af   :  { %v1182_v27 = vpop.eup %1181  ;;  %v459_v30 = vmul.f32 1.442695, %v456_v28  ;;  %v432_v33 = vsub.f32 %v394_v7, %v430_v31 }
 0x1b0   :  { %v461_v29 = vsel %vm424_vm1, %v1182_v27, 0.0 }
 0x1b1   :  { %462 = vadd.xlane.f32.xlu2 %v461_v29  ;;  %v1184_v32 = vpop.eup %1183  ;;  %1185 = vpow2.f32 %v459_v30  ;;  %v435_v35 = vmul.f32 1.442695, %v432_v33 }
 0x1b2   :  { %v437_v34 = vsel %vm424_vm1, %v1184_v32, 0.0 }
 0x1b3   :  { %1187 = vpow2.f32 %v435_v35 }
 0x1b7   :  { %v1186_v36 = vpop.eup %1185 }
 0x1b8   :  { %v464_v39 = vsel %vm424_vm1, %v1186_v36, 0.0 }
 0x1b9   :  { %438 = vadd.xlane.f32.xlu2 %v437_v34  ;;  %v1188_v40 = vpop.eup %1187 }
 0x1ba   :  { %v440_v45 = vsel %vm424_vm1, %v1188_v40, 0.0 }
 0x1bf   :  { %v526_v37 = vpop.permute.xlu0 %525 }
 0x1c0   :  { %v531_v38 = vsel %vm481_vm2, %v526_v37, 0 }
 0x1c1   :  { %465 = vadd.xlane.f32.xlu2 %v464_v39  ;;  %540 = vmatpush.bf16.msra.mxu2 %v531_v38 }
 0x1c6   :  { %v550_v41 = vpop.permute.xlu1 %549 }
 0x1c7   :  { %v555_v42 = vsel %vm481_vm2, %v550_v41, 0  ;;  %v594_v43 = vpop.permute.xlu0 %593 }
 0x1c8   :  { %564 = vmatpush.bf16.msra.mxu3 %v555_v42  ;;  %v598_v44 = vsel %vm359_vm0, %v594_v43, 0 }
 0x1c9   :  { %441 = vadd.xlane.f32.xlu2 %v440_v45 }
 0x1cc   :  { %636 = vmatpush.bf16.xpose.msrb.mxu3 %v598_v44 }
 0x1ce   :  { %v477_v46 = vpop.permute.xlu1 %476 }
 0x1cf   :  { %v483_v47 = vsel %vm481_vm2, %v477_v46, 0  ;;  %v502_v48 = vpop.permute.xlu0 %501 }
 0x1d0   :  { %492 = vmatpush.bf16.msra.mxu0 %v483_v47  ;;  %v507_v49 = vsel %vm481_vm2, %v502_v48, 0 }
 0x1d1   :  { %516 = vmatpush.bf16.msra.mxu1 %v507_v49 }
 0x1d6   :  { %v573_v50 = vpop.permute.xlu1 %572 }
 0x1d7   :  { %v578_v51 = vsel %vm359_vm0, %v573_v50, 0  ;;  %v596_v52 = vpop.permute.xlu0 %595 }
 0x1d8   :  { %587 = vmatpush.bf16.xpose.msrb.mxu0 %v578_v51  ;;  %v601_v53 = vsel %vm359_vm0, %v596_v52, 0 }
 0x1d9   :  { %610 = vmatpush.bf16.xpose.msrb.mxu1 %v601_v53 }
 0x1e1   :  { %570 = vrot.lane.b32.xlu2 %v1422_v13, %s1240_s1 }
 0x224   :  { %v463_v54 = vpop.xlane.xlu2 %462 }
 0x225   :  { %1189 = vrcp.f32 %v463_v54 }
 0x22b   :  { %v1190_v55 = vpop.eup %1189 }
 0x22c   :  { %v469_v56 = vmul.f32 %v1190_v55, %v1182_v27  ;;  %v439_v57 = vpop.xlane.xlu2 %438 }
 0x22d   :  { %1191 = vrcp.f32 %v439_v57 }
 0x22e   :  { %v471_v58 = vpack.c.bf16 %v469_v56, %v469_v56 }
 0x230   :  { %1079 = vmatmul.msk.bf16.vlgmr.msra.gmra.mxu2 %vm424_vm1, %v471_v58 }
 0x233   :  { %v1192_v59 = vpop.eup %1191 }
 0x234   :  { %v445_v60 = vmul.f32 %v1192_v59, %v1184_v32  ;;  %v466_v61 = vpop.xlane.xlu2 %465 }
 0x235   :  { %1193 = vrcp.f32 %v466_v61 }
 0x236   :  { %v447_v62 = vpack.c.bf16 %v445_v60, %v445_v60 }
 0x238   :  { %1077 = vmatmul.msk.bf16.vlgmr.msra.gmra.mxu0 %vm424_vm1, %v447_v62 }
 0x23b   :  { %v1194_v63 = vpop.eup %1193 }
 0x23c   :  { %v470_v0 = vmul.f32 %v1194_v63, %v1186_v36  ;;  %v442_v1 = vpop.xlane.xlu2 %441 }
 0x23d   :  { %1195 = vrcp.f32 %v442_v1 }
 0x23e   :  { %v472_v2 = vpack.c.bf16 %v470_v0, %v470_v0 }
 0x240   :  { %1080 = vmatmul.msk.bf16.vlgmr.msra.gmra.mxu3 %vm424_vm1, %v472_v2 }
 0x243   :  { %v1196_v3 = vpop.eup %1195 }
 0x244   :  { %v446_v4 = vmul.f32 %v1196_v3, %v1188_v40  ;;  %v571_v5 = vpop.permute.xlu2 %570 }
 0x245   :  { %v575_v6 = vsel %vm359_vm0, %v571_v5, 0 }
 0x246   :  { %v448_v7 = vpack.c.bf16 %v446_v4, %v446_v4  ;;  %623 = vmatpush.bf16.xpose.msrb.mxu2 %v575_v6 }
 0x248   :  { %1078 = vmatmul.msk.bf16.vlgmr.msra.gmra.mxu1 %vm424_vm1, %v448_v7  ;;  %1081 = vmatmul.msk.bf16.vlgmr.msrb.gmra.mxu0 %vm359_vm0, %v571_v5 }
 0x24d   :  { %1083 = vmatmul.msk.bf16.vlgmr.msrb.gmra.mxu2 %vm359_vm0, %v573_v50 }
 0x250   :  { %1084 = vmatmul.msk.bf16.vlgmr.msrb.gmra.mxu3 %vm359_vm0, %v596_v52 }
 0x258   :  { %1082 = vmatmul.msk.bf16.vlgmr.msrb.gmra.mxu1 %vm359_vm0, %v594_v43 }
 0x2b3   :  { %v1462_v8 = vpop.f32.mrf.mxu2 }
 0x2b5   :  { %v1464_v9 = vpop.f32.mrf.mxu0 }
 0x2bb   :  { %v544_v10 = vpop.f32.mrf.mxu2 }
 0x2bc   :  { %v1099_v10 = vld [vmem:[%s1566_s4 + $0x10] sm:$0xf] }
 0x2bd   :  { %v496_v11 = vpop.f32.mrf.mxu0 }
 0x2be   :  { %v1160_v11 = vld [vmem:[%s1566_s4 + $0x14] sm:$0xf0] }
 0x2c3   :  { %v1466_v12 = vpop.f32.mrf.mxu3 }
 0x2c5   :  { %v1468_v14 = vpop.f32.mrf.mxu1  ;;  %v589_v16 = vpop.f32.mrf.mxu0 }
 0x2c6   :  { %v642_v17 = vsel %vm424_vm1, %v589_v16, -inf }
 0x2c7   :  { %643 = vmax.xlane.f32.xlu0 %v642_v17  ;;  %v1100_v17 = vor.u32 %v1160_v11, %v1099_v10 }
 0x2cb   :  { %v568_v20 = vpop.f32.mrf.mxu3 }
 0x2cc   :  { %v1101_v20 = vld [vmem:[%s1566_s4 + $0x18] sm:$0xf0] }
 0x2cd   :  { %v520_v21 = vpop.f32.mrf.mxu1  ;;  %v591_v22 = vpop.f32.mrf.mxu0 }
 0x2d0   :  { %v625_v23 = vpop.f32.mrf.mxu2 }
 0x2d1   :  { %v666_v24 = vsel %vm424_vm1, %v625_v23, -inf }
 0x2d2   :  { %667 = vmax.xlane.f32.xlu2 %v666_v24 }
 0x2d3   :  { %v638_v25 = vpop.f32.mrf.mxu3 }
 0x2d4   :  { %v669_v26 = vsel %vm424_vm1, %v638_v25, -inf }
 0x2d5   :  { %v612_v27 = vpop.f32.mrf.mxu1  ;;  %670 = vmax.xlane.f32.xlu1 %v669_v26 }
 0x2d6   :  { %v645_v29 = vsel %vm424_vm1, %v612_v27, -inf }
 0x2d8   :  { %v627_v28 = vpop.f32.mrf.mxu2 }
 0x2da   :  { %646 = vmax.xlane.f32.xlu2 %v645_v29 }
 0x2db   :  { %v640_v30 = vpop.f32.mrf.mxu3 }
 0x2dd   :  { %v614_v31 = vpop.f32.mrf.mxu1 }
 0x2f2   :  { %732 = vrot.lane.b32.xlu2 %v1422_v13, %s1241_s17 }
 0x2fa   :  { %711 = vrot.lane.b32.xlu2 %v1433_v19, %s1241_s17 }
 0x33a   :  { %v644_v32 = vpop.xlane.xlu0 %643 }
 0x33b   :  { %v648_v33 = vsub.f32 %v589_v16, %v644_v32  ;;  %v1159_v16 = vld [vmem:[%s1566_s4 + $0x14] sm:$0xf]  ;;  %v1091_v32 = vld [vmem:[%s1566_s4] sm:$0xf] }
 0x33c   :  { %v1104_v22 = vor.u32 %v1159_v16, %v1101_v20 }
 0x33d   :  { %v650_v34 = vmul.f32 1.442695, %v648_v33  ;;  %v1158_v33 = vld [vmem:[%s1566_s4 + $0x4] sm:$0xf0] }
 0x33f   :  { %1197 = vpow2.f32 %v650_v34  ;;  %v1157_v34 = vld [vmem:[%s1566_s4 + $0x4] sm:$0xf] }
 0x345   :  { %v1198_v35 = vpop.eup %1197  ;;  %v668_v36 = vpop.xlane.xlu2 %667 }
 0x346   :  { %v672_v37 = vsub.f32 %v625_v23, %v668_v36  ;;  %v654_v38 = vsel %vm424_vm1, %v1198_v35, 0.0  ;;  %v1093_v36 = vld [vmem:[%s1566_s4 + $0x8] sm:$0xf0] }
 0x347   :  { %655 = vadd.xlane.f32.xlu0 %v654_v38  ;;  %v1117_v38 = vld [vmem:[%s1567_s5 + $0x10] sm:$0xf] }
 0x348   :  { %v674_v39 = vmul.f32 1.442695, %v672_v37  ;;  %v671_v40 = vpop.xlane.xlu1 %670  ;;  %v1096_v37 = vor.u32 %v1157_v34, %v1093_v36 }
 0x349   :  { %v673_v13 = vsub.f32 %v638_v25, %v671_v40  ;;  %v1163_v40 = vld [vmem:[%s1567_s5 + $0x14] sm:$0xf] }
 0x34a   :  { %1199 = vpow2.f32 %v674_v39  ;;  %v1164_v39 = vld [vmem:[%s1567_s5 + $0x14] sm:$0xf0] }
 0x34b   :  { %v676_v45 = vmul.f32 1.442695, %v673_v13  ;;  %v1109_v13 = vld [vmem:[%s1567_s5] sm:$0xf] }
 0x34d   :  { %v647_v41 = vpop.xlane.xlu2 %646 }
 0x34e   :  { %v649_v42 = vsub.f32 %v612_v27, %v647_v41  ;;  %v1118_v41 = vor.u32 %v1164_v39, %v1117_v38 }
 0x350   :  { %v1200_v43 = vpop.eup %1199  ;;  %v652_v44 = vmul.f32 1.442695, %v649_v42  ;;  %v1119_v42 = vld [vmem:[%s1567_s5 + $0x18] sm:$0xf0] }
 0x351   :  { %v678_v19 = vsel %vm424_vm1, %v1200_v43, 0.0 }
 0x352   :  { %1201 = vpow2.f32 %v652_v44  ;;  %679 = vadd.xlane.f32.xlu1 %v678_v19  ;;  %v1162_v44 = vld [vmem:[%s1567_s5 + $0x4] sm:$0xf0]  ;;  %v1161_v19 = vld [vmem:[%s1567_s5 + $0x4] sm:$0xf] }
 0x353   :  { %1203 = vpow2.f32 %v676_v45  ;;  %v1110_v45 = vor.u32 %v1162_v44, %v1109_v13 }
 0x355   :  { %v733_v46 = vpop.permute.xlu2 %732 }
 0x356   :  { %v738_v47 = vsel %vm481_vm2, %v733_v46, 0  ;;  %v1111_v46 = vld [vmem:[%s1567_s5 + $0x8] sm:$0xf0] }
 0x357   :  { %747 = vmatpush.bf16.msra.mxu2 %v738_v47  ;;  %v1114_v47 = vor.u32 %v1161_v19, %v1111_v46 }
 0x358   :  { %v1202_v48 = vpop.eup %1201 }
 0x359   :  { %v657_v49 = vsel %vm424_vm1, %v1202_v48, 0.0  ;;  %v1204_v51 = vpop.eup %1203 }
 0x35a   :  { %658 = vadd.xlane.f32.xlu0 %v657_v49  ;;  %v681_v53 = vsel %vm424_vm1, %v1204_v51, 0.0 }
 0x35b   :  { %897 = vmatpush.bf16.msrb.mxu2 %v1118_v41 }
 0x35d   :  { %v712_v50 = vpop.permute.xlu2 %711 }
 0x35e   :  { %v717_v52 = vsel %vm481_vm2, %v712_v50, 0 }
 0x35f   :  { %726 = vmatpush.bf16.msra.mxu1 %v717_v52  ;;  %898 = vmatpush.bf16.msrb.mxu2 %v1110_v45 }
 0x362   :  { %682 = vadd.xlane.f32.xlu0 %v681_v53 }
 0x363   :  { %850 = vmatpush.bf16.msrb.mxu1 %v1104_v22 }
 0x367   :  { %851 = vmatpush.bf16.msrb.mxu1 %v1096_v37 }
 0x36b   :  { %753 = vrot.lane.b32.xlu1 %v1425_v15, %s1241_s17 }
 0x376   :  { %690 = vrot.lane.b32.xlu0 %v1430_v18, %s1241_s17 }
 0x3ba   :  { %v656_v54 = vpop.xlane.xlu0 %655 }
 0x3c5   :  { %v680_v55 = vpop.xlane.xlu1 %679 }
 0x3c6   :  { %1205 = vrcp.f32 %v680_v55 }
 0x3cc   :  { %v1206_v56 = vpop.eup %1205 }
 0x3cd   :  { %v686_v57 = vmul.f32 %v1206_v56, %v1200_v43  ;;  %v659_v58 = vpop.xlane.xlu0 %658  ;;  %v1122_v43 = vor.u32 %v1163_v40, %v1119_v42 }
 0x3ce   :  { %1207 = vrcp.f32 %v659_v58 }
 0x3cf   :  { %v688_v59 = vpack.c.bf16 %v686_v57, %v686_v57 }
 0x3d1   :  { %1087 = vmatmul.msk.bf16.vlgmr.msra.gmra.mxu2 %vm424_vm1, %v688_v59 }
 0x3d4   :  { %v1208_v60 = vpop.eup %1207 }
 0x3d5   :  { %v663_v61 = vmul.f32 %v1208_v60, %v1202_v48  ;;  %v683_v62 = vpop.xlane.xlu0 %682 }
 0x3d6   :  { %1209 = vrcp.f32 %v683_v62 }
 0x3d7   :  { %v665_v63 = vpack.c.bf16 %v663_v61, %v663_v61  ;;  %1211 = vrcp.f32 %v656_v54 }
 0x3d9   :  { %1086 = vmatmul.msk.bf16.vlgmr.msra.gmra.mxu1 %vm424_vm1, %v665_v63 }
 0x3dc   :  { %v1210_v15 = vpop.eup %1209 }
 0x3dd   :  { %v687_v0 = vmul.f32 %v1210_v15, %v1204_v51  ;;  %v754_v18 = vpop.permute.xlu1 %753  ;;  %v1212_v3 = vpop.eup %1211 }
 0x3de   :  { %v759_v1 = vsel %vm481_vm2, %v754_v18, 0  ;;  %v662_v4 = vmul.f32 %v1212_v3, %v1198_v35  ;;  %v1092_v35 = vor.u32 %v1158_v33, %v1091_v32 }
 0x3df   :  { %v689_v2 = vpack.c.bf16 %v687_v0, %v687_v0  ;;  %768 = vmatpush.bf16.msra.mxu3 %v759_v1 }
 0x3e0   :  { %v664_v7 = vpack.c.bf16 %v662_v4, %v662_v4 }
 0x3e2   :  { %1088 = vmatmul.msk.bf16.vlgmr.msra.gmra.mxu3 %vm424_vm1, %v689_v2 }
 0x3e3   :  { %911 = vmatpush.bf16.msrb.mxu3 %v1122_v43 }
 0x3e7   :  { %912 = vmatpush.bf16.msrb.mxu3 %v1114_v47 }
 0x3e8   :  { %v691_v5 = vpop.permute.xlu0 %690 }
 0x3e9   :  { %v696_v6 = vsel %vm481_vm2, %v691_v5, 0 }
 0x3ea   :  { %705 = vmatpush.bf16.msra.mxu0 %v696_v6 }
 0x3ed   :  { %1085 = vmatmul.msk.bf16.vlgmr.msra.gmra.mxu0 %vm424_vm1, %v664_v7 }
 0x3ee   :  { %836 = vmatpush.bf16.msrb.mxu0 %v1100_v17 }
 0x3f2   :  { %837 = vmatpush.bf16.msrb.mxu0 %v1092_v35 }
 0x454   :  { %v749_v21 = vpop.f32.mrf.mxu2 }
 0x456   :  { %v728_v23 = vpop.f32.mrf.mxu1 }
 0x45c   :  { %v751_v24 = vpop.f32.mrf.mxu2 }
 0x45e   :  { %v730_v25 = vpop.f32.mrf.mxu1 }
 0x465   :  { %v770_v26 = vpop.f32.mrf.mxu3 }
 0x466   :  { %v1171_v27 = vpack.i.bf16 %v770_v26, %v749_v21 }
 0x468   :  { %1172 = vrot.lane.b32.xlu1 %v1171_v27, %s1242_s26 }
 0x46a   :  { %v707_v28 = vpop.f32.mrf.mxu0 }
 0x46b   :  { %v1176_v29 = vpack.i.bf16 %v728_v23, %v707_v28 }
 0x46d   :  { %1177 = vrot.lane.b32.xlu2 %v1176_v29, %s1242_s26  ;;  %v772_v30 = vpop.f32.mrf.mxu3 }
 0x472   :  { %v709_v31 = vpop.f32.mrf.mxu0 }
 0x4c7   :  { %v1178_v48 = vpop.permute.xlu2 %1177 }
 0x4c8   :  { %v1180_v49 = vunpack.i.h.bf16 %v1178_v48  ;;  %v1179_v50 = vunpack.i.l.bf16 %v1178_v48 }
 0x4ca   :  { %v783_v51 = vsel %vm359_vm0, %v1468_v14, %v1180_v49  ;;  %v782_v52 = vsel %vm359_vm0, %v1464_v9, %v1179_v50  ;;  %v800_v9 = vld [vmem:[%s1568_s6] sm:$0x3]  ;;  %s1243_s6 = smov [#allocation2]  }
 0x4cb   :  { %v784_v53 = vpack.c.bf16 %v783_v51, %v782_v52  ;;  %v802_v14 = vperm.slane %v800_v9, 0  ;;  %v803_v60 = vperm.slane %v800_v9, 1  ;;  %s931_s28 = sshll.u32 %s1243_s6, 4  ;;  %s932_s28 = int_to_ptr.vmem [resolvable:$true] %s931_s28 }
 0x4cd   :  { %1105 = vmatmul.msk.bf16.vlgmr.msrb.gmra.mxu0 %vm826_vm3, %v784_v53  ;;  %1106 = vmatmul.msk.bf16.vlgmr.msrb.gmra.mxu1 %vm826_vm3, %v784_v53 }
 0x4da   :  { %v1173_v54 = vpop.permute.xlu1 %1172 }
 0x4db   :  { %v1175_v55 = vunpack.i.h.bf16 %v1173_v54  ;;  %v1174_v56 = vunpack.i.l.bf16 %v1173_v54 }
 0x4dd   :  { %v794_v57 = vsel %vm359_vm0, %v1466_v12, %v1175_v55  ;;  %v793_v58 = vsel %vm359_vm0, %v1462_v8, %v1174_v56  ;;  %v862_v8 = vld [vmem:[%s1569_s7] sm:$0x3]  ;;  %s1244_s7 = smov 256  }
 0x4de   :  { %v795_v59 = vpack.c.bf16 %v794_v57, %v793_v58  ;;  %v864_v2 = vperm.slane %v862_v8, 0  ;;  %v865_v3 = vperm.slane %v862_v8, 1 }
 0x4e0   :  { %1123 = vmatmul.msk.bf16.vlgmr.msrb.gmra.mxu2 %vm826_vm3, %v795_v59  ;;  %1124 = vmatmul.msk.bf16.vlgmr.msrb.gmra.mxu3 %vm826_vm3, %v795_v59 }
 0x54a   :  { %v839_v61 = vpop.f32.mrf.mxu0  ;;  %v853_v62 = vpop.f32.mrf.mxu1 }
 0x54b   :  { %v840_v63 = vadd.f32 %v839_v61, %v802_v14  ;;  %v854_v15 = vadd.f32 %v853_v62, %v803_v60 }
 0x54d   :  { %919 = vst [vmem:[#allocation2] sm:$0xff] %v840_v63 }
 0x54e   :  { %920 = vst [vmem:[#allocation2 + $0x8] sm:$0xff] %v854_v15 }
 0x552   :  { %v841_v0 = vpop.f32.mrf.mxu0  ;;  %v855_v12 = vpop.f32.mrf.mxu1 }
 0x553   :  { %v842_v18 = vadd.f32 %v841_v0, %v802_v14  ;;  %v856_v1 = vadd.f32 %v855_v12, %v803_v60 }
 0x555   :  { %921 = vst [vmem:[#allocation2 + $0x20] sm:$0xff] %v842_v18 }
 0x556   :  { %922 = vst [vmem:[#allocation2 + $0x28] sm:$0xff] %v856_v1 }
 0x563   :  { %v900_v4 = vpop.f32.mrf.mxu2  ;;  %v914_v5 = vpop.f32.mrf.mxu3 }
 0x564   :  { %v901_v6 = vadd.f32 %v900_v4, %v864_v2  ;;  %v915_v7 = vadd.f32 %v914_v5, %v865_v3 }
 0x566   :  { %923 = vst [vmem:[#allocation2 + $0x10] sm:$0xff] %v901_v6 }
 0x567   :  { %924 = vst [vmem:[#allocation2 + $0x18] sm:$0xff] %v915_v7 }
 0x56b   :  { %v902_v10 = vpop.f32.mrf.mxu2  ;;  %v916_v11 = vpop.f32.mrf.mxu3 }
 0x56c   :  { %v903_v16 = vadd.f32 %v902_v10, %v864_v2  ;;  %v917_v17 = vadd.f32 %v916_v11, %v865_v3 }
 0x56e   :  { %925 = vst [vmem:[#allocation2 + $0x30] sm:$0xff] %v903_v16 }
 0x56f   :  { %926 = vst [vmem:[#allocation2 + $0x38] sm:$0xff] %v917_v17 }
 0x570   :  { %939 = dma.vmem_to_hbm [thread:$0]  %s932_s28, 1024, %s934_s30, [#allocation3], %s1244_s7, %s1244_s7, %s1242_s26  }
 0x571   :  { %1237 = dma.done.wait [#allocation3], 1024  }
 0x572   :  { %1238 = vsyncadd [#allocation3], 4294966272 }
 0x573   :  { %944 = vsyncpa [#allocation3], 1 }

</bundles_post_ra>
